<compile_context>
chip_gen: v7x
topology: tpu7x:2x2x1
jax: 0.10.0
libtpu: 0.0.40
codegen_flags: <defaults>
</compile_context>

<pallas_src>
import functools

import jax
import jax.numpy as jnp
from jax.experimental import pallas as pl
from jax.experimental.pallas import tpu as pltpu

_LANE = 128          # lane axis alignment (last dim)
_MAX_BATCH_TILE = 512  # rows per grid step (review: 512 amortizes step overhead)


def _round_up(n: int, m: int) -> int:
    return ((n + m - 1) // m) * m


# ---------------------------------------------------------------------------
# Kernel
# ---------------------------------------------------------------------------
def _fused_mlp_kernel(*refs, num_layers, relu_flags, out_dims_p, compute_dtype):
    """Fused MLP over one batch tile.

    refs = (x_ref, w0_ref, ..., w_{L-1}_ref, bias_stack_ref, o_ref)

    Weights are pre-transposed/padded to [in_p, out_p] (MXU-ready, no XLU
    transpose in-kernel).  bias_stack is a single f32 [L, max_out_p] array.
    Intermediate activations never leave vregs/VMEM.
    """
    x_ref = refs[0]
    w_refs = refs[1:1 + num_layers]
    b_ref = refs[1 + num_layers]
    o_ref = refs[2 + num_layers]

    h = x_ref[...].astype(jnp.float32)
    for i in range(num_layers):
        if relu_flags[i]:
            h = jnp.maximum(h, 0.0)            # ReLU in f32 (VPU)
        # Cast only the dot operand (bf16 = native MXU path on v5e/v6e/v7x);
        # keep f32 accumulation.
        h = jnp.dot(h.astype(compute_dtype), w_refs[i][...],
                    preferred_element_type=jnp.float32)
        h = h + b_ref[i:i + 1, :out_dims_p[i]]  # static [1, out_p] bias row
    o_ref[...] = h.astype(o_ref.dtype)


# ---------------------------------------------------------------------------
# One-time parameter preparation (hoisted out of the per-call path)
# ---------------------------------------------------------------------------
def prepare_mlp_params(params, in_features, final_relu=False,
                       param_dtype=jnp.bfloat16):
    """params: list of (W, b), W: [out, in], b: [out]  (PyTorch layout).

    Returns a cached, padded, pre-transposed pytree ready for mlp_forward.
    """
    num_layers = len(params)
    if num_layers == 0:
        raise ValueError("MLP needs at least one Linear layer")

    # Shape validation (input width and chained layer widths).
    prev = in_features
    for li, (w, b) in enumerate(params):
        out_f, in_f = w.shape
        if in_f != prev:
            raise ValueError(
                f"layer {li}: expected in_features={prev}, got W.shape={w.shape}")
        if b.shape != (out_f,):
            raise ValueError(f"layer {li}: bias shape {b.shape} != ({out_f},)")
        prev = out_f

    dims = [in_features] + [w.shape[0] for (w, _) in params]
    dims_p = [max(_round_up(d, _LANE), _LANE) for d in dims]
    max_out_p = max(dims_p[1:])

    weights_p = []
    bias_stack = jnp.zeros((num_layers, max_out_p), jnp.float32)
    for i, (w, b) in enumerate(params):
        w_t = jnp.zeros((dims_p[i], dims_p[i + 1]), param_dtype)
        w_t = w_t.at[:dims[i], :dims[i + 1]].set(w.T.astype(param_dtype))
        weights_p.append(w_t)
        bias_stack = bias_stack.at[i, :dims[i + 1]].set(b.astype(jnp.float32))

    final_relu_layer = num_layers if final_relu else num_layers - 1
    relu_flags = tuple(i < final_relu_layer for i in range(num_layers))

    return {
        "weights": tuple(jax.device_put(w) for w in weights_p),
        "bias_stack": jax.device_put(bias_stack),
        "dims": tuple(dims),
        "dims_p": tuple(dims_p),
        "relu_flags": relu_flags,
        "compute_dtype": param_dtype,
    }


# ---------------------------------------------------------------------------
# Forward pass (single fused pallas_call per invocation)
# ---------------------------------------------------------------------------
def mlp_forward(x, prepared):
    dims = prepared["dims"]
    dims_p = prepared["dims_p"]
    weights = prepared["weights"]
    bias_stack = prepared["bias_stack"]
    compute_dtype = prepared["compute_dtype"]
    num_layers = len(weights)

    batch, in_f = x.shape
    if in_f != dims[0]:
        raise ValueError(f"x has {in_f} features, MLP expects {dims[0]}")

    # Sublane alignment: bf16 vregs pack 16 rows, f32 pack 8.
    sub = 16 if jnp.dtype(compute_dtype) == jnp.dtype(jnp.bfloat16) else 8
    batch_p = max(_round_up(batch, sub), sub)
    tb = min(batch_p, _MAX_BATCH_TILE)
    batch_p = _round_up(batch_p, tb)
    grid = (batch_p // tb,)

    # Zero-pad the input tile (the only per-call data prep).
    x_p = jnp.zeros((batch_p, dims_p[0]), jnp.float32)
    x_p = x_p.at[:batch, :in_f].set(x.astype(jnp.float32))

    # BlockSpecs: activations streamed over the batch grid; weights/bias
    # resident (constant index_map -> no re-DMA across grid steps).
    in_specs = [pl.BlockSpec((tb, dims_p[0]), lambda i: (i, 0))]
    in_specs += [pl.BlockSpec(w.shape, lambda i: (0, 0)) for w in weights]
    in_specs += [pl.BlockSpec(bias_stack.shape, lambda i: (0, 0))]
    out_specs = pl.BlockSpec((tb, dims_p[-1]), lambda i: (i, 0))

    kernel = functools.partial(
        _fused_mlp_kernel,
        num_layers=num_layers,
        relu_flags=prepared["relu_flags"],
        out_dims_p=tuple(dims_p[1:]),
        compute_dtype=compute_dtype,
    )

    # VMEM budget: resident (double-buffered) weights + bias, double-buffered
    # x/out tiles, and the live intermediate h (worst-case width, 2x slack).
    w_item = jnp.dtype(compute_dtype).itemsize
    w_bytes = sum(int(a) * int(b) for a, b in zip(dims_p[:-1], dims_p[1:])) * w_item
    b_bytes = bias_stack.size * 4
    act_bytes = 2 * tb * dims_p[0] * 4 + 2 * tb * dims_p[-1] * jnp.dtype(x.dtype).itemsize
    h_bytes = 2 * tb * max(dims_p) * 4
    needed = 2 * (w_bytes + b_bytes) + act_bytes + h_bytes
    vmem_limit = int(min(max(needed, 32 * 2**20), 100 * 2**20))

    out_p = pl.pallas_call(
        kernel,
        out_shape=jax.ShapeDtypeStruct((batch_p, dims_p[-1]), x.dtype),
        grid=grid,
        in_specs=in_specs,
        out_specs=out_specs,
        compiler_params=pltpu.CompilerParams(
            dimension_semantics=("parallel",),   # megacore-shard batch on v7x
            vmem_limit_bytes=vmem_limit,
        ),
    )(x_p, *weights, bias_stack)

    # Slice away the padding.
    return out_p[:batch, :dims[-1]]


# ---------------------------------------------------------------------------
# Reference / init helpers
# ---------------------------------------------------------------------------
def init_mlp_params(key, layer_sizes):
    """nn.Linear-shaped params with uniform(+/- 1/sqrt(fan_in)) init."""
    params = []
    for i in range(len(layer_sizes) - 1):
        in_f, out_f = layer_sizes[i], layer_sizes[i + 1]
        key, kw, kb = jax.random.split(key, 3)
        bound = 1.0 / jnp.sqrt(jnp.float32(in_f))
        w = jax.random.uniform(kw, (out_f, in_f), jnp.float32, -bound, bound)
        b = jax.random.uniform(kb, (out_f,), jnp.float32, -bound, bound)
        params.append((w, b))
    return params


def mlp_reference(x, params, final_relu=False):
    """Pure-JAX reference with identical semantics."""
    num_layers = len(params)
    final_relu_layer = num_layers if final_relu else num_layers - 1
    for i, (w, b) in enumerate(params):
        if i < final_relu_layer:
            x = jnp.maximum(x, 0.0)
        x = x @ w.T + b
    return x


if __name__ == "__main__":
    layer_sizes = [32, 64, 32, 16]   # 3 Linear layers: ReLU,L0,ReLU,L1,L2
    batch = 8

    key = jax.random.PRNGKey(0)
    key, kx = jax.random.split(key)
    x = jax.random.normal(kx, (batch, layer_sizes[0]), jnp.float32)
    params = init_mlp_params(key, layer_sizes)

    ref = mlp_reference(x, params, final_relu=False)

    # f32 MXU path: tight numerical check.
    prep_f32 = prepare_mlp_params(params, layer_sizes[0], final_relu=False,
                                  param_dtype=jnp.float32)
    out_f32 = jax.block_until_ready(mlp_forward(x, prep_f32))
    assert out_f32.shape == (batch, layer_sizes[-1])
    assert jnp.allclose(out_f32, ref, atol=1e-4, rtol=1e-4)

    # bf16-fed MXU path (default / fast): looser tolerance.
    prep_bf16 = prepare_mlp_params(params, layer_sizes[0], final_relu=False,
                                   param_dtype=jnp.bfloat16)
    out_bf16 = jax.block_until_ready(mlp_forward(x, prep_bf16))
    assert out_bf16.shape == (batch, layer_sizes[-1])
    assert jnp.allclose(out_bf16, ref, atol=2e-2, rtol=2e-2)

    print("KERNEL_OK")
</pallas_src>

<mosaic_0001>
module attributes {stable_mosaic.version = 11 : i64} {
  func.func @_fused_mlp_kernel(%arg0: i32, %arg1: memref<8x128xf32, #tpu.memory_space<vmem>>, %arg2: memref<128x128xf32, #tpu.memory_space<vmem>>, %arg3: memref<128x128xf32, #tpu.memory_space<vmem>>, %arg4: memref<128x128xf32, #tpu.memory_space<vmem>>, %arg5: memref<3x128xf32, #tpu.memory_space<vmem>>, %arg6: memref<8x128xf32, #tpu.memory_space<vmem>>) attributes {dimension_semantics = [#tpu.dimension_semantics<parallel>], iteration_bounds = array<i64: 1>, scalar_prefetch = 0 : i64, scratch_operands = 0 : i64, tpu.core_type = #tpu.core_type<tc>, window_params = [{transform_indices = @transform_0, window_bounds = array<i64: 8, 128>}, {pipeline_mode = #tpu.pipeline_mode<synchronous>, transform_indices = @transform_1, window_bounds = array<i64: 128, 128>}, {pipeline_mode = #tpu.pipeline_mode<synchronous>, transform_indices = @transform_2, window_bounds = array<i64: 128, 128>}, {pipeline_mode = #tpu.pipeline_mode<synchronous>, transform_indices = @transform_3, window_bounds = array<i64: 128, 128>}, {pipeline_mode = #tpu.pipeline_mode<synchronous>, transform_indices = @transform_4, window_bounds = array<i64: 3, 128>}, {transform_indices = @transform_5, window_bounds = array<i64: 8, 128>}]} {
    %c0 = arith.constant 0 : index
    %c0_0 = arith.constant 0 : index
    %0 = vector.load %arg1[%c0, %c0_0] : memref<8x128xf32, #tpu.memory_space<vmem>>, vector<8x128xf32>
    %cst = arith.constant 0.000000e+00 : f32
    %1 = vector.broadcast %cst : f32 to vector<8x128xf32>
    %2 = arith.maximumf %0, %1 : vector<8x128xf32>
    %c0_1 = arith.constant 0 : index
    %c0_2 = arith.constant 0 : index
    %3 = vector.load %arg2[%c0_1, %c0_2] : memref<128x128xf32, #tpu.memory_space<vmem>>, vector<128x128xf32>
    %cst_3 = arith.constant dense<0.000000e+00> : vector<8x128xf32>
    %4 = tpu.matmul %2, %3, %cst_3 {dimension_numbers = #tpu.dot_dimension_numbers<[1], [0], [0], [1], [0, 0, 1, 1], [], []>} : vector<8x128xf32>, vector<128x128xf32>, vector<8x128xf32> -> vector<8x128xf32>
    %c0_4 = arith.constant 0 : index
    %c0_5 = arith.constant 0 : index
    %5 = vector.load %arg5[%c0_4, %c0_5] : memref<3x128xf32, #tpu.memory_space<vmem>>, vector<1x128xf32>
    %6 = vector.broadcast %5 : vector<1x128xf32> to vector<8x128xf32>
    %7 = arith.addf %4, %6 : vector<8x128xf32>
    %cst_6 = arith.constant 0.000000e+00 : f32
    %8 = vector.broadcast %cst_6 : f32 to vector<8x128xf32>
    %9 = arith.maximumf %7, %8 : vector<8x128xf32>
    %c0_7 = arith.constant 0 : index
    %c0_8 = arith.constant 0 : index
    %10 = vector.load %arg3[%c0_7, %c0_8] : memref<128x128xf32, #tpu.memory_space<vmem>>, vector<128x128xf32>
    %cst_9 = arith.constant dense<0.000000e+00> : vector<8x128xf32>
    %11 = tpu.matmul %9, %10, %cst_9 {dimension_numbers = #tpu.dot_dimension_numbers<[1], [0], [0], [1], [0, 0, 1, 1], [], []>} : vector<8x128xf32>, vector<128x128xf32>, vector<8x128xf32> -> vector<8x128xf32>
    %c1 = arith.constant 1 : index
    %c0_10 = arith.constant 0 : index
    %12 = vector.load %arg5[%c1, %c0_10] : memref<3x128xf32, #tpu.memory_space<vmem>>, vector<1x128xf32>
    %13 = vector.broadcast %12 : vector<1x128xf32> to vector<8x128xf32>
    %14 = arith.addf %11, %13 : vector<8x128xf32>
    %c0_11 = arith.constant 0 : index
    %c0_12 = arith.constant 0 : index
    %15 = vector.load %arg4[%c0_11, %c0_12] : memref<128x128xf32, #tpu.memory_space<vmem>>, vector<128x128xf32>
    %cst_13 = arith.constant dense<0.000000e+00> : vector<8x128xf32>
    %16 = tpu.matmul %14, %15, %cst_13 {dimension_numbers = #tpu.dot_dimension_numbers<[1], [0], [0], [1], [0, 0, 1, 1], [], []>} : vector<8x128xf32>, vector<128x128xf32>, vector<8x128xf32> -> vector<8x128xf32>
    %c2 = arith.constant 2 : index
    %c0_14 = arith.constant 0 : index
    %17 = vector.load %arg5[%c2, %c0_14] : memref<3x128xf32, #tpu.memory_space<vmem>>, vector<1x128xf32>
    %18 = vector.broadcast %17 : vector<1x128xf32> to vector<8x128xf32>
    %19 = arith.addf %16, %18 : vector<8x128xf32>
    %c0_15 = arith.constant 0 : index
    %c0_16 = arith.constant 0 : index
    %20 = vector.load %arg6[%c0_15, %c0_16] : memref<8x128xf32, #tpu.memory_space<vmem>>, vector<8x128xf32>
    tpu.vector_store %arg6[%c0_15, %c0_16], %19 {strides = array<i32>} : memref<8x128xf32, #tpu.memory_space<vmem>>, vector<8x128xf32>,
    return
  }
  func.func @transform_0(%arg0: i32) -> (i32, i32) {
    %c0_i32 = arith.constant 0 : i32
    %c0_i32_0 = arith.constant 0 : i32
    return %arg0, %c0_i32 : i32, i32
  }
  func.func @transform_1(%arg0: i32) -> (i32, i32) {
    %c0_i32 = arith.constant 0 : i32
    %c0_i32_0 = arith.constant 0 : i32
    %c0_i32_1 = arith.constant 0 : i32
    return %c0_i32, %c0_i32_0 : i32, i32
  }
  func.func @transform_2(%arg0: i32) -> (i32, i32) {
    %c0_i32 = arith.constant 0 : i32
    %c0_i32_0 = arith.constant 0 : i32
    %c0_i32_1 = arith.constant 0 : i32
    return %c0_i32, %c0_i32_0 : i32, i32
  }
  func.func @transform_3(%arg0: i32) -> (i32, i32) {
    %c0_i32 = arith.constant 0 : i32
    %c0_i32_0 = arith.constant 0 : i32
    %c0_i32_1 = arith.constant 0 : i32
    return %c0_i32, %c0_i32_0 : i32, i32
  }
  func.func @transform_4(%arg0: i32) -> (i32, i32) {
    %c0_i32 = arith.constant 0 : i32
    %c0_i32_0 = arith.constant 0 : i32
    %c0_i32_1 = arith.constant 0 : i32
    return %c0_i32, %c0_i32_0 : i32, i32
  }
  func.func @transform_5(%arg0: i32) -> (i32, i32) {
    %c0_i32 = arith.constant 0 : i32
    %c0_i32_0 = arith.constant 0 : i32
    return %arg0, %c0_i32 : i32, i32
  }
}

</mosaic_0001>

<bundles_post_ra>
// kernel: tpu_custom_call.1
= control target key start
LH: loop header
LB: loop body
LE: loop exit
PB: predicated region body
PF: predicated region fallthrough
CT: control target
= control target key end

     0   :  { %10 = vsyncpa [#allocation3], 0  ;;  %s875_s0 = inlined_call_operand.hbm [shape: f32[8,128], index: 0, kind: input, shape index: {}]   ;;  %s876_s1 = inlined_call_operand.hbm [shape: f32[128,128], index: 1, kind: input, shape index: {}]   ;;  %s877_s2 = inlined_call_operand.hbm [shape: f32[128,128], index: 2, kind: input, shape index: {}]   ;;  %s878_s3 = inlined_call_operand.hbm [shape: f32[128,128], index: 3, kind: input, shape index: {}]   ;;  %s879_s4 = inlined_call_operand.vmem [shape: f32[3,128], index: 4, kind: input, shape index: {}]   ;;  %s880_s5 = inlined_call_operand.hbm [shape: f32[8,128], index: 5, kind: output, shape index: {}]  }
   0x1   :  { %11 = vsyncpa [#allocation6], 0 }
   0x2   :  { %12 = vsyncpa [#allocation9], 0 }
   0x3   :  { %13 = vsyncpa [#allocation4], 0  ;;  %s727_s18 = smov [#allocation5]   ;;  %s609_s22 = scalar_lea.hbm %s876_s1, 2048 }
   0x4   :  { %s29_s19 = sshll.u32 %s727_s18, 4  ;;  %p610_p0 = scmp.ne.s32.totalorder %s876_s1, %s609_s22  ;;  %s30_s19 = int_to_ptr.vmem [resolvable:$true] %s29_s19 }
   0x5   :  { %p613_p1 = scmp.lt.u32.totalorder %s609_s22, %s876_s1 }
   0x7   :  { %p615_p2 = pnand %p613_p1, %p610_p0 }
   0x9   :  { %618 = shalt.err (!%p615_p2)
}
   0xa   :  { %s619_s27 = scalar_lea.vmem %s30_s19, 2048  ;;  %p624_p4 = scmp.lt.s32.totalorder %s30_s19, %s30_s19 }
   0xb   :  { %p620_p3 = scmp.ne.s32.totalorder %s30_s19, %s619_s27  ;;  %p625_p5 = scmp.lt.s32.totalorder %s619_s27, %s619_s27 }
   0xd   :  { %p626_p6 = por %p625_p5, %p624_p4 }
   0xf   :  { %p627_p7 = pnand %p626_p6, %p620_p3 }
  0x11   :  { %630 = shalt.err (!%p627_p7)
}
  0x12   :  { %s728_s28 = smov 128   ;;  %s729_s29 = smov 8  }
  0x13   :  { %35 = dma.hbm_to_vmem [thread:$0]  %s876_s1, 2048, %s30_s19, [#allocation6], %s728_s28, %s728_s28, %s729_s29  }
  0x14   :  { %s730_s7 = smov [#allocation2]   ;;  %s731_s9 = smov [#allocation7]  }
  0x15   :  { %s20_s8 = sshll.u32 %s730_s7, 4  ;;  %s41_s10 = sshll.u32 %s731_s9, 4  ;;  %s21_s8 = int_to_ptr.vmem [resolvable:$true] %s20_s8  ;;  %s42_s10 = int_to_ptr.vmem [resolvable:$true] %s41_s10 }
  0x16   :  { %s631_s13 = scalar_lea.hbm %s875_s0, 128 }
  0x17   :  { %p632_p8 = scmp.ne.s32.totalorder %s875_s0, %s631_s13  ;;  %p635_p9 = scmp.lt.u32.totalorder %s631_s13, %s875_s0 }
  0x19   :  { %p637_p10 = pnand %p635_p9, %p632_p8 }
  0x1b   :  { %640 = shalt.err (!%p637_p10)
}
  0x1c   :  { %s641_s1 = scalar_lea.vmem %s21_s8, 128  ;;  %p646_p12 = scmp.lt.s32.totalorder %s21_s8, %s21_s8 }
  0x1d   :  { %p642_p11 = scmp.ne.s32.totalorder %s21_s8, %s641_s1  ;;  %p647_p13 = scmp.lt.s32.totalorder %s641_s1, %s641_s1 }
  0x1f   :  { %p648_p0 = por %p647_p13, %p646_p12 }
  0x21   :  { %p649_p1 = pnand %p648_p0, %p642_p11 }
  0x23   :  { %652 = shalt.err (!%p649_p1)
}
  0x24   :  { %23 = dma.hbm_to_vmem [thread:$0]  %s875_s0, 128, %s21_s8, [#allocation3]  }
  0x25   :  { %s653_s22 = scalar_lea.hbm %s877_s2, 2048 }
  0x26   :  { %p654_p2 = scmp.ne.s32.totalorder %s877_s2, %s653_s22  ;;  %p657_p3 = scmp.lt.u32.totalorder %s653_s22, %s877_s2 }
  0x28   :  { %p659_p4 = pnand %p657_p3, %p654_p2 }
  0x2a   :  { %662 = shalt.err (!%p659_p4)
}
  0x2b   :  { %s663_s27 = scalar_lea.vmem %s42_s10, 2048  ;;  %p668_p6 = scmp.lt.s32.totalorder %s42_s10, %s42_s10 }
  0x2c   :  { %p664_p5 = scmp.ne.s32.totalorder %s42_s10, %s663_s27  ;;  %p669_p7 = scmp.lt.s32.totalorder %s663_s27, %s663_s27 }
  0x2e   :  { %p670_p8 = por %p669_p7, %p668_p6 }
  0x30   :  { %p671_p9 = pnand %p670_p8, %p664_p5 }
  0x32   :  { %674 = shalt.err (!%p671_p9)
}
  0x33   :  { %47 = dma.hbm_to_vmem [thread:$0]  %s877_s2, 2048, %s42_s10, [#allocation6], %s728_s28, %s728_s28, %s729_s29  }
  0x34   :  { %s732_s6 = smov [#allocation8]   ;;  %s675_s11 = scalar_lea.hbm %s878_s3, 2048 }
  0x35   :  { %s53_s7 = sshll.u32 %s732_s6, 4  ;;  %p676_p10 = scmp.ne.s32.totalorder %s878_s3, %s675_s11  ;;  %s54_s7 = int_to_ptr.vmem [resolvable:$true] %s53_s7 }
  0x36   :  { %p679_p11 = scmp.lt.u32.totalorder %s675_s11, %s878_s3 }
  0x38   :  { %p681_p12 = pnand %p679_p11, %p676_p10 }
  0x3a   :  { %684 = shalt.err (!%p681_p12)
}
  0x3b   :  { %s685_s16 = scalar_lea.vmem %s54_s7, 2048  ;;  %p690_p0 = scmp.lt.s32.totalorder %s54_s7, %s54_s7 }
  0x3c   :  { %p686_p13 = scmp.ne.s32.totalorder %s54_s7, %s685_s16  ;;  %p691_p1 = scmp.lt.s32.totalorder %s685_s16, %s685_s16 }
  0x3e   :  { %p692_p2 = por %p691_p1, %p690_p0 }
  0x40   :  { %p693_p3 = pnand %p692_p2, %p686_p13 }
  0x42   :  { %696 = shalt.err (!%p693_p3)
}
  0x43   :  { %59 = dma.hbm_to_vmem [thread:$0]  %s878_s3, 2048, %s54_s7, [#allocation9], %s728_s28, %s728_s28, %s729_s29  }
  0x44   :  { %719 = dma.done.wait [#allocation3], 128  }
  0x45   :  { %720 = vsyncadd [#allocation3], 4294967168 }
  0x46   :  { %721 = dma.done.wait [#allocation6], 4096  }
  0x47   :  { %722 = vsyncadd [#allocation6], 4294963200 }
  0x48   :  { %723 = dma.done.wait [#allocation9], 2048  }
  0x49   :  { %724 = vsyncadd [#allocation9], 4294965248  ;;  %v733_v0 = vmov 0.0|0.0   ;;  %vm734_vm0 = vmmov 0   ;;  %v735_v1 = vmov 0.0   ;;  %v76_v2 = vld [vmem:[#allocation5] sm:$0xff] }
  0x4a   :  { %527 = vmatprep.subr.bf16.mxu0 %v733_v0  ;;  %454 = vmatprep.mubr.msk.f32.mxu0 %vm734_vm0, %v735_v1  ;;  %v77_v3 = vld [vmem:[#allocation5 + $0x8] sm:$0xff]  ;;  %v78_v4 = vld [vmem:[#allocation5 + $0x10] sm:$0xff]  ;;  %v79_v6 = vld [vmem:[#allocation5 + $0x18] sm:$0xff]  ;;  %s736_s19 = smov [#allocation10]  }
  0x4b   :  { %551 = vmatprep.subr.bf16.mxu1 %v733_v0  ;;  %489 = vmatprep.mubr.msk.f32.mxu1 %vm734_vm0, %v735_v1  ;;  %v528_v5 = vpack.c.bf16 %v77_v3, %v76_v2  ;;  %v531_v7 = vpack.c.bf16 %v79_v6, %v78_v4  ;;  %v80_v8 = vld [vmem:[#allocation5 + $0x20] sm:$0xff]  ;;  %v81_v9 = vld [vmem:[#allocation5 + $0x28] sm:$0xff]  ;;  %v170_v12 = vld [vmem:[#allocation7 + $0x10] sm:$0xff]  ;;  %s357_s20 = sshll.u32 %s736_s19, 4  ;;  %s358_s20 = int_to_ptr.vmem [resolvable:$true] %s357_s20 }
  0x4c   :  { %v168_v10 = vld [vmem:[#allocation7] sm:$0xff]  ;;  %v169_v11 = vld [vmem:[#allocation7 + $0x8] sm:$0xff]  ;;  %v171_v13 = vld [vmem:[#allocation7 + $0x18] sm:$0xff]  ;;  %v534_v14 = vpack.c.bf16 %v81_v9, %v80_v8  ;;  %s697_s21 = scalar_lea.vmem %s358_s20, 128  ;;  %p702_p5 = scmp.lt.s32.totalorder %s358_s20, %s358_s20 }
  0x4d   :  { %529 = vmatpush3.bf16.msra.mxu0 %v528_v5  ;;  %v552_v15 = vpack.c.bf16 %v169_v11, %v168_v10  ;;  %v82_v16 = vld [vmem:[#allocation5 + $0x30] sm:$0xff]  ;;  %v83_v17 = vld [vmem:[#allocation5 + $0x38] sm:$0xff]  ;;  %v555_v18 = vpack.c.bf16 %v171_v13, %v170_v12  ;;  %v172_v19 = vld [vmem:[#allocation7 + $0x20] sm:$0xff]  ;;  %p698_p4 = scmp.ne.s32.totalorder %s358_s20, %s697_s21  ;;  %p703_p6 = scmp.lt.s32.totalorder %s697_s21, %s697_s21 }
  0x4e   :  { %530 = vmatprep.subr.bf16.mxu0 %v733_v0  ;;  %v173_v20 = vld [vmem:[#allocation7 + $0x28] sm:$0xff]  ;;  %v537_v21 = vpack.c.bf16 %v83_v17, %v82_v16  ;;  %v84_v22 = vld [vmem:[#allocation5 + $0x40] sm:$0xff]  ;;  %v174_v25 = vld [vmem:[#allocation7 + $0x30] sm:$0xff] }
  0x4f   :  { %553 = vmatpush3.bf16.msra.mxu1 %v552_v15  ;;  %v85_v23 = vld [vmem:[#allocation5 + $0x48] sm:$0xff]  ;;  %v558_v24 = vpack.c.bf16 %v173_v20, %v172_v19  ;;  %v175_v26 = vld [vmem:[#allocation7 + $0x38] sm:$0xff]  ;;  %v86_v28 = vld [vmem:[#allocation5 + $0x50] sm:$0xff]  ;;  %p704_p7 = por %p703_p6, %p702_p5 }
  0x50   :  { %554 = vmatprep.subr.bf16.mxu1 %v733_v0  ;;  %v540_v27 = vpack.c.bf16 %v85_v23, %v84_v22  ;;  %v87_v29 = vld [vmem:[#allocation5 + $0x58] sm:$0xff]  ;;  %v561_v30 = vpack.c.bf16 %v175_v26, %v174_v25  ;;  %v176_v31 = vld [vmem:[#allocation7 + $0x40] sm:$0xff]  ;;  %v177_v32 = vld [vmem:[#allocation7 + $0x48] sm:$0xff] }
  0x51   :  { %532 = vmatpush3.bf16.msra.mxu0 %v531_v7  ;;  %v543_v33 = vpack.c.bf16 %v87_v29, %v86_v28  ;;  %v88_v34 = vld [vmem:[#allocation5 + $0x60] sm:$0xff]  ;;  %v89_v35 = vld [vmem:[#allocation5 + $0x68] sm:$0xff]  ;;  %v564_v36 = vpack.c.bf16 %v177_v32, %v176_v31  ;;  %v178_v37 = vld [vmem:[#allocation7 + $0x50] sm:$0xff]  ;;  %p705_p8 = pnand %p704_p7, %p698_p4 }
  0x52   :  { %533 = vmatprep.subr.bf16.mxu0 %v733_v0  ;;  %v179_v38 = vld [vmem:[#allocation7 + $0x58] sm:$0xff]  ;;  %v546_v39 = vpack.c.bf16 %v89_v35, %v88_v34  ;;  %v90_v40 = vld [vmem:[#allocation5 + $0x70] sm:$0xff]  ;;  %v180_v43 = vld [vmem:[#allocation7 + $0x60] sm:$0xff] }
  0x53   :  { %556 = vmatpush3.bf16.msra.mxu1 %v555_v18  ;;  %v91_v41 = vld [vmem:[#allocation5 + $0x78] sm:$0xff]  ;;  %v567_v42 = vpack.c.bf16 %v179_v38, %v178_v37  ;;  %v181_v44 = vld [vmem:[#allocation7 + $0x68] sm:$0xff]  ;;  %v182_v49 = vld [vmem:[#allocation7 + $0x70] sm:$0xff] }
  0x54   :  { %557 = vmatprep.subr.bf16.mxu1 %v733_v0  ;;  %v549_v45 = vpack.c.bf16 %v91_v41, %v90_v40  ;;  %v74_v46 = vld [vmem:[#allocation2] sm:$0xff]  ;;  %v570_v47 = vpack.c.bf16 %v181_v44, %v180_v43  ;;  %v259_v52 = vld [vmem:[#allocation8] sm:$0xff]  ;;  %v260_v53 = vld [vmem:[#allocation8 + $0x8] sm:$0xff] }
  0x55   :  { %535 = vmatpush3.bf16.msra.mxu0 %v534_v14  ;;  %v75_v48 = vmax.f32 %v74_v46, 0.0  ;;  %v183_v50 = vld [vmem:[#allocation7 + $0x78] sm:$0xff]  ;;  %v261_v54 = vld [vmem:[#allocation8 + $0x10] sm:$0xff]  ;;  %v576_v55 = vpack.c.bf16 %v260_v53, %v259_v52  ;;  %v263_v58 = vld [vmem:[#allocation8 + $0x20] sm:$0xff] }
  0x56   :  { %536 = vmatprep.subr.bf16.mxu0 %v733_v0  ;;  %v573_v51 = vpack.c.bf16 %v183_v50, %v182_v49  ;;  %v262_v56 = vld [vmem:[#allocation8 + $0x18] sm:$0xff]  ;;  %v264_v59 = vld [vmem:[#allocation8 + $0x28] sm:$0xff]  ;;  %v265_v61 = vld [vmem:[#allocation8 + $0x30] sm:$0xff] }
  0x57   :  { %559 = vmatpush3.bf16.msra.mxu1 %v558_v24  ;;  %v579_v57 = vpack.c.bf16 %v262_v56, %v261_v54  ;;  %v582_v60 = vpack.c.bf16 %v264_v59, %v263_v58  ;;  %v266_v62 = vld [vmem:[#allocation8 + $0x38] sm:$0xff]  ;;  %v268_v2 = vld [vmem:[#allocation8 + $0x48] sm:$0xff]  ;;  %v269_v4 = vld [vmem:[#allocation8 + $0x50] sm:$0xff] }
  0x58   :  { %560 = vmatprep.subr.bf16.mxu1 %v733_v0  ;;  %v585_v63 = vpack.c.bf16 %v266_v62, %v265_v61  ;;  %v270_v5 = vld [vmem:[#allocation8 + $0x58] sm:$0xff]  ;;  %v271_v7 = vld [vmem:[#allocation8 + $0x60] sm:$0xff]  ;;  %v272_v8 = vld [vmem:[#allocation8 + $0x68] sm:$0xff] }
  0x59   :  { %538 = vmatpush3.bf16.msra.mxu0 %v537_v21  ;;  %v591_v6 = vpack.c.bf16 %v270_v5, %v269_v4  ;;  %v594_v9 = vpack.c.bf16 %v272_v8, %v271_v7  ;;  %v368_v10 = vld [vmem:[%s879_s4] ss:$0 sm:$0xff]  ;;  %v273_v15 = vld [vmem:[#allocation8 + $0x70] sm:$0xff]  ;;  %v369_v18 = vld [vmem:[%s879_s4 + $0x1] ss:$0 sm:$0xff] }
  0x5a   :  { %539 = vmatprep.subr.bf16.mxu0 %v733_v0  ;;  %v274_v16 = vld [vmem:[#allocation8 + $0x78] sm:$0xff] }
  0x5b   :  { %562 = vmatpush3.bf16.msra.mxu1 %v561_v30  ;;  %v597_v17 = vpack.c.bf16 %v274_v16, %v273_v15  ;;  %v370_v21 = vld [vmem:[%s879_s4 + $0x2] ss:$0 sm:$0xff] }
  0x5c   :  { %563 = vmatprep.subr.bf16.mxu1 %v733_v0 }
  0x5d   :  { %541 = vmatpush3.bf16.msra.mxu0 %v540_v27 }
  0x5e   :  { %542 = vmatprep.subr.bf16.mxu0 %v733_v0 }
  0x5f   :  { %565 = vmatpush3.bf16.msra.mxu1 %v564_v36 }
  0x60   :  { %566 = vmatprep.subr.bf16.mxu1 %v733_v0 }
  0x61   :  { %544 = vmatpush3.bf16.msra.mxu0 %v543_v33 }
  0x62   :  { %545 = vmatprep.subr.bf16.mxu0 %v733_v0 }
  0x63   :  { %568 = vmatpush3.bf16.msra.mxu1 %v567_v42 }
  0x64   :  { %569 = vmatprep.subr.bf16.mxu1 %v733_v0 }
  0x65   :  { %547 = vmatpush3.bf16.msra.mxu0 %v546_v39 }
  0x66   :  { %548 = vmatprep.subr.bf16.mxu0 %v733_v0 }
  0x67   :  { %571 = vmatpush3.bf16.msra.mxu1 %v570_v47 }
  0x68   :  { %572 = vmatprep.subr.bf16.mxu1 %v733_v0 }
  0x69   :  { %550 = vmatpush3.bf16.msra.mxu0 %v549_v45 }
  0x6a   :  { %575 = vmatprep.subr.bf16.mxu0 %v733_v0 }
  0x6b   :  { %574 = vmatpush3.bf16.msra.mxu1 %v573_v51 }
  0x6c   :  { %455 = vmatmul.mubr.f32.vlgmr.msra.gmra.mrb[0].mxu0 %v75_v48 }
  0x6d   :  { %524 = vmatprep.mubr.msk.f32.mxu0 %vm734_vm0, %v735_v1  ;;  %577 = vmatpush3.bf16.msra.mxu0 %v576_v55  ;;  %v267_v1 = vld [vmem:[#allocation8 + $0x40] sm:$0xff] }
  0x6e   :  { %578 = vmatprep.subr.bf16.mxu0 %v733_v0  ;;  %v588_v3 = vpack.c.bf16 %v268_v2, %v267_v1 }
  0x71   :  { %580 = vmatpush3.bf16.msra.mxu0 %v579_v57 }
  0x72   :  { %581 = vmatprep.subr.bf16.mxu0 %v733_v0 }
  0x75   :  { %583 = vmatpush3.bf16.msra.mxu0 %v582_v60 }
  0x76   :  { %584 = vmatprep.subr.bf16.mxu0 %v733_v0 }
  0x79   :  { %586 = vmatpush3.bf16.msra.mxu0 %v585_v63 }
  0x7a   :  { %587 = vmatprep.subr.bf16.mxu0 %v733_v0 }
  0x7d   :  { %589 = vmatpush3.bf16.msra.mxu0 %v588_v3 }
  0x7e   :  { %590 = vmatprep.subr.bf16.mxu0 %v733_v0 }
  0x81   :  { %592 = vmatpush3.bf16.msra.mxu0 %v591_v6 }
  0x82   :  { %593 = vmatprep.subr.bf16.mxu0 %v733_v0 }
  0x85   :  { %595 = vmatpush3.bf16.msra.mxu0 %v594_v9 }
  0x86   :  { %596 = vmatprep.subr.bf16.mxu0 %v733_v0 }
  0x89   :  { %598 = vmatpush3.bf16.msra.mxu0 %v597_v17 }
 0x13f   :  { %v163_v11 = vpop.f32.mrb[0].mxu0 }
 0x140   :  { %v164_v12 = vadd.f32 %v368_v10, %v163_v11  ;;  %v456_v13 = vpop.f32.mrb[1].mxu0 }
 0x142   :  { %v167_v14 = vmax.f32 %v164_v12, 0.0 }
 0x144   :  { %490 = vmatmul.mubr.f32.vlgmr.msra.gmra.mrb[0].mxu1 %v167_v14 }
 0x217   :  { %v255_v19 = vpop.f32.mrb[0].mxu1 }
 0x218   :  { %v256_v20 = vadd.f32 %v369_v18, %v255_v19  ;;  %v491_v0 = vpop.f32.mrb[1].mxu1 }
 0x21a   :  { %525 = vmatmul.mubr.f32.vlgmr.msra.gmra.mrb[2].mxu0 %v256_v20 }
 0x2ed   :  { %v346_v22 = vpop.f32.mrb[2].mxu0 }
 0x2ee   :  { %v347_v23 = vadd.f32 %v370_v21, %v346_v22  ;;  %v526_v24 = vpop.f32.mrb[3].mxu0 }
 0x2f0   :  { %350 = vst [vmem:[#allocation10] sm:$0xff] %v347_v23 }
 0x2f1   :  { %708 = shalt.err (!%p705_p8)
}
 0x2f2   :  { %s709_s24 = scalar_lea.hbm %s880_s5, 128 }
 0x2f3   :  { %p710_p9 = scmp.ne.s32.totalorder %s880_s5, %s709_s24  ;;  %p713_p10 = scmp.lt.u32.totalorder %s709_s24, %s880_s5 }
 0x2f5   :  { %p715_p11 = pnand %p713_p10, %p710_p9 }
 0x2f7   :  { %718 = shalt.err (!%p715_p11)
}
 0x2f8   :  { %360 = dma.vmem_to_hbm [thread:$0]  %s358_s20, 128, %s880_s5, [#allocation4]  }
 0x2f9   :  { %725 = dma.done.wait [#allocation4], 128  }
 0x2fa   :  { %726 = vsyncadd [#allocation4], 4294967168 }
 0x2fb   :  { %364 = vsyncpa [#allocation3], 1 }
 0x2fc   :  { %365 = vsyncpa [#allocation6], 1 }
 0x2fd   :  { %366 = vsyncpa [#allocation9], 1 }
 0x2fe   :  { %367 = vsyncpa [#allocation4], 1 }

</bundles_post_ra>
